<compile_context>
chip_gen: v6e
topology: v6e:2x2x1
jax: 0.10.0
libtpu: 0.0.40
codegen_flags: <defaults>
</compile_context>

<pallas_src>
import jax
import jax.numpy as jnp
from jax.experimental import pallas as pl
from jax.experimental.pallas import tpu as pltpu

# ---- sizes (hidden_dim scaled down to 32 for the small demo) ----------------
HIDDEN = 32
NUM_CLASSES = 2
BATCH = 2
TOPO_DIM = 6
FUSION_IN = HIDDEN * 4 + HIDDEN // 2 + HIDDEN // 2        # 160 (crystal|kspace|scalar|physics|spectral|ph)
FUS1, FUS2, FUS3 = HIDDEN * 2, HIDDEN, HIDDEN // 2        # 64, 32, 16
MAIN_H, CONF_H, AUX_H = HIDDEN // 4, HIDDEN // 8, 32      # 8, 4, 32

PACK_IN = 256                                             # 160 fused | 6 topo | 1 bias-one | 89 zero
BIAS_LANE = FUSION_IN + TOPO_DIM                          # 166 : constant 1.0 lane (folds L1 bias into MXU)

# weight slab row offsets (each layer padded to 128 output lanes)
W1_R0, W2_R0, W3_R0, W4_R0, W5_R0 = 0, 256, 384, 512, 640
W_ROWS = 768                                              # 256 + 4*128

OUT_W = 128                                               # lane-dense output slab
O_FEAT = 0
O_LOGIT = FUS3                                            # 16
O_AUX = FUS3 + NUM_CLASSES                                # 18
O_CONF = FUS3 + 2 * NUM_CLASSES                           # 20
O_USED = O_CONF + 1                                       # 21


def _cdiv(a, b):
    return -(-a // b)


def _round_up(a, m):
    return _cdiv(a, m) * m


# ----------------------------------------------------------------------------
# Pallas kernel: whole head for one batch tile (5 MXU pushes, 1 output slab).
# All activations stay lane-dense (TB, 128); padded lanes are exact zeros by
# construction of the weight/bias slabs, so they never contaminate results.
# ----------------------------------------------------------------------------
def _head_kernel(x_ref, w_ref, b_ref, out_ref):
    bf16 = jnp.bfloat16
    x = x_ref[...]                                                     # (TB, 256) bf16, lane 166 == 1.0

    # L1: fusion Linear(160,64)+BN(folded)+ReLU || aux Linear(6,32)+ReLU
    #     bias arrives through weight row BIAS_LANE * input lane 166 (== 1.0)
    z1 = jnp.dot(x, w_ref[W1_R0:W2_R0, :], preferred_element_type=jnp.float32)
    h1 = jnp.maximum(z1, 0.0).astype(bf16)                             # (TB,128); cols 96:128 == 0

    # L2: fusion Linear(64,32)+BN+ReLU || aux Linear(32,2)   (block-diagonal)
    z2 = jnp.dot(h1, w_ref[W2_R0:W3_R0, :],
                 preferred_element_type=jnp.float32) + b_ref[0:1, :]
    aux = z2[:, FUS2:FUS2 + NUM_CLASSES]                               # aux_logits (no ReLU)
    h2 = jnp.maximum(z2, 0.0).astype(bf16)                             # ReLU on aux lanes is harmless:
                                                                       # w3 rows >= 32 are zero.

    # L3: fusion Linear(32,16)+BN+ReLU -> graph_features
    z3 = jnp.dot(h2, w_ref[W3_R0:W4_R0, :],
                 preferred_element_type=jnp.float32) + b_ref[1:2, :]
    feat_full = jnp.maximum(z3, 0.0)                                   # cols 16:128 == 0
    h3 = feat_full.astype(bf16)

    # L4: main Linear(16,8)+ReLU || conf Linear(16,4)+ReLU   (shared input)
    z4 = jnp.dot(h3, w_ref[W4_R0:W5_R0, :],
                 preferred_element_type=jnp.float32) + b_ref[2:3, :]
    h4 = jnp.maximum(z4, 0.0).astype(bf16)

    # L5: main Linear(8,2) || conf Linear(4,1)+Sigmoid       (block-diagonal)
    z5 = jnp.dot(h4, w_ref[W5_R0:W_ROWS, :],
                 preferred_element_type=jnp.float32) + b_ref[3:4, :]
    logits = z5[:, :NUM_CLASSES]
    conf = jax.nn.sigmoid(z5[:, NUM_CLASSES:NUM_CLASSES + 1])

    # single lane-dense (TB, 128) write: feat | logits | aux | conf | zero pad
    feat = feat_full[:, :FUS3]
    pad = jnp.zeros((x.shape[0], OUT_W - O_USED), jnp.float32)
    out_ref[...] = jnp.concatenate([feat, logits, aux, conf, pad], axis=1)


# ----------------------------------------------------------------------------
# Wrapper
# ----------------------------------------------------------------------------
def classifier_head(branch_features, topo_combined, packed_params, *, tile_b=None):
    """branch_features: list of [B, d_i] embeddings (sum d_i == FUSION_IN);
       topo_combined: [B, 6]."""
    B = branch_features[0].shape[0]
    if tile_b is None:
        if B <= 8:
            tile_b = 8
        else:
            # Big tiles amortize per-step overhead (VMEM footprint is only a
            # few MiB even at 1024 rows), but keep >=2 grid steps so v7x's two
            # TensorCores both get work on the "parallel" batch axis.
            tile_b = min(1024, _round_up(_cdiv(B, 2), 8))
    nb = _cdiv(B, tile_b)
    Bp = nb * tile_b

    bf16 = jnp.bfloat16
    # Build the packed (Bp, 256) bf16 input slab in one concat:
    #   fused branches | topo | 1.0 bias lane | zero lanes, then zero-pad rows.
    pieces = [p.astype(bf16) for p in branch_features] + [topo_combined.astype(bf16)]
    width = sum(p.shape[1] for p in pieces)
    assert width == FUSION_IN + TOPO_DIM
    pieces.append(jnp.ones((B, 1), bf16))                               # bias lane (index BIAS_LANE)
    pieces.append(jnp.zeros((B, PACK_IN - width - 1), bf16))
    x = jnp.concatenate(pieces, axis=1)
    if Bp > B:
        x = jnp.concatenate([x, jnp.zeros((Bp - B, PACK_IN), bf16)], axis=0)

    w, b = packed_params["w"], packed_params["b"]

    # NOTE: the weight/bias index maps deliberately ignore the grid index
    # (constant block) so the slabs are fetched once and stay VMEM-resident.
    slab = pl.pallas_call(
        _head_kernel,
        out_shape=jax.ShapeDtypeStruct((Bp, OUT_W), jnp.float32),
        grid=(nb,),
        in_specs=[pl.BlockSpec((tile_b, PACK_IN), lambda i: (i, 0)),
                  pl.BlockSpec(w.shape, lambda i: (0, 0)),
                  pl.BlockSpec(b.shape, lambda i: (0, 0))],
        out_specs=pl.BlockSpec((tile_b, OUT_W), lambda i: (i, 0)),
        compiler_params=pltpu.CompilerParams(
            dimension_semantics=("parallel",),          # v7x: batch tiles split over 2 TCs
            vmem_limit_bytes=32 * 1024 * 1024),
    )(x, w, b)

    feat = slab[:B, O_FEAT:O_FEAT + FUS3]
    logits = slab[:B, O_LOGIT:O_LOGIT + NUM_CLASSES]
    aux = slab[:B, O_AUX:O_AUX + NUM_CLASSES]
    conf = slab[:B, O_CONF:O_CONF + 1]
    return {"logits": logits, "graph_features": feat,
            "aux_logits": aux, "confidence": conf}


# ----------------------------------------------------------------------------
# Parameter construction: raw (f32, BN folded) + packed kernel slabs.
# ----------------------------------------------------------------------------
def _linear(key, fan_in, fan_out):
    kw, kb = jax.random.split(key)
    lim = 1.0 / jnp.sqrt(fan_in)
    w = jax.random.uniform(kw, (fan_in, fan_out), jnp.float32, -lim, lim)
    b = jax.random.uniform(kb, (fan_out,), jnp.float32, -lim, lim)
    return w, b


def _bn(key, dim):
    k1, k2, k3, k4 = jax.random.split(key, 4)
    gamma = 1.0 + 0.1 * jax.random.normal(k1, (dim,), jnp.float32)
    beta = 0.1 * jax.random.normal(k2, (dim,), jnp.float32)
    rmean = 0.1 * jax.random.normal(k3, (dim,), jnp.float32)
    rvar = 0.5 + jax.random.uniform(k4, (dim,), jnp.float32)   # strictly positive
    return gamma, beta, rmean, rvar


def _fold_bn(w, b, gamma, beta, rmean, rvar, eps=1e-5):
    # eval-mode BatchNorm1d after Linear, folded: y = x@W' + b'
    scale = gamma / jnp.sqrt(rvar + eps)
    return w * scale[None, :], (b - rmean) * scale + beta


def _pack_params(r):
    # ---- single bf16 weight slab: all 5 layers stacked, padded to 128 lanes
    W = jnp.zeros((W_ROWS, 128), jnp.float32)
    # L1: fused lanes 0:160 -> fusion cols 0:64 ; topo lanes 160:166 -> aux cols 64:96
    W = W.at[W1_R0:W1_R0 + FUSION_IN, :FUS1].set(r["f1w"])
    W = W.at[W1_R0 + FUSION_IN:W1_R0 + FUSION_IN + TOPO_DIM, FUS1:FUS1 + AUX_H].set(r["a1w"])
    # L1 biases folded into the row hit by the constant-1.0 input lane
    W = W.at[W1_R0 + BIAS_LANE, :FUS1].set(r["f1b"])
    W = W.at[W1_R0 + BIAS_LANE, FUS1:FUS1 + AUX_H].set(r["a1b"])
    # L2: block-diagonal fusion(64->32) / aux(32->2)
    W = W.at[W2_R0:W2_R0 + FUS1, :FUS2].set(r["f2w"])
    W = W.at[W2_R0 + FUS1:W2_R0 + FUS1 + AUX_H, FUS2:FUS2 + NUM_CLASSES].set(r["a2w"])
    # L3: fusion(32->16)
    W = W.at[W3_R0:W3_R0 + FUS2, :FUS3].set(r["f3w"])
    # L4: shared-input main(16->8) | conf(16->4)
    W = W.at[W4_R0:W4_R0 + FUS3, :MAIN_H].set(r["m1w"])
    W = W.at[W4_R0:W4_R0 + FUS3, MAIN_H:MAIN_H + CONF_H].set(r["c1w"])
    # L5: block-diagonal main(8->2) / conf(4->1)
    W = W.at[W5_R0:W5_R0 + MAIN_H, :NUM_CLASSES].set(r["m2w"])
    W = W.at[W5_R0 + MAIN_H:W5_R0 + MAIN_H + CONF_H, NUM_CLASSES:NUM_CLASSES + 1].set(r["c2w"])

    # ---- single f32 bias slab: rows 0..3 = L2..L5 biases, padded to 128 lanes
    Bm = jnp.zeros((8, 128), jnp.float32)
    Bm = Bm.at[0, :FUS2].set(r["f2b"])
    Bm = Bm.at[0, FUS2:FUS2 + NUM_CLASSES].set(r["a2b"])
    Bm = Bm.at[1, :FUS3].set(r["f3b"])
    Bm = Bm.at[2, :MAIN_H].set(r["m1b"])
    Bm = Bm.at[2, MAIN_H:MAIN_H + CONF_H].set(r["c1b"])
    Bm = Bm.at[3, :NUM_CLASSES].set(r["m2b"])
    Bm = Bm.at[3, NUM_CLASSES:NUM_CLASSES + 1].set(r["c2b"])

    return {"w": W.astype(jnp.bfloat16), "b": Bm}


def build_params(key):
    ks = jax.random.split(key, 12)
    r = {}
    # fusion_network (BN folded)
    w, b = _linear(ks[0], FUSION_IN, FUS1)
    r["f1w"], r["f1b"] = _fold_bn(w, b, *_bn(ks[1], FUS1))
    w, b = _linear(ks[2], FUS1, FUS2)
    r["f2w"], r["f2b"] = _fold_bn(w, b, *_bn(ks[3], FUS2))
    w, b = _linear(ks[4], FUS2, FUS3)
    r["f3w"], r["f3b"] = _fold_bn(w, b, *_bn(ks[5], FUS3))
    # main_classifier
    r["m1w"], r["m1b"] = _linear(ks[6], FUS3, MAIN_H)
    r["m2w"], r["m2b"] = _linear(ks[7], MAIN_H, NUM_CLASSES)
    # aux_classifier (Linear(6,32) -> ReLU -> Linear(32,2))
    r["a1w"], r["a1b"] = _linear(ks[8], TOPO_DIM, AUX_H)
    r["a2w"], r["a2b"] = _linear(ks[9], AUX_H, NUM_CLASSES)
    # confidence_head
    r["c1w"], r["c1b"] = _linear(ks[10], FUS3, CONF_H)
    r["c2w"], r["c2b"] = _linear(ks[11], CONF_H, 1)
    return _pack_params(r), r


def reference_head(fused, topo, r):
    """Pure-JAX reference on the UNPACKED weights, mirroring the kernel's bf16
    weight/activation rounding (f32 accumulation, f32 biases)."""
    bf = lambda a: a.astype(jnp.bfloat16)
    dot = lambda a, w: jnp.dot(bf(a), bf(w), preferred_element_type=jnp.float32)
    h = jax.nn.relu(dot(fused, r["f1w"]) + r["f1b"])
    h = jax.nn.relu(dot(h, r["f2w"]) + r["f2b"])
    feat = jax.nn.relu(dot(h, r["f3w"]) + r["f3b"])
    logits = dot(jax.nn.relu(dot(feat, r["m1w"]) + r["m1b"]), r["m2w"]) + r["m2b"]
    t = jax.nn.relu(dot(topo, r["a1w"]) + r["a1b"])
    aux = dot(t, r["a2w"]) + r["a2b"]
    c = jax.nn.relu(dot(feat, r["c1w"]) + r["c1b"])
    conf = jax.nn.sigmoid(dot(c, r["c2w"]) + r["c2b"])
    return {"logits": logits, "graph_features": feat,
            "aux_logits": aux, "confidence": conf}


if __name__ == "__main__":
    key = jax.random.PRNGKey(0)
    kp, kc, kk, ksc, kph, ksp, kphh, kt = jax.random.split(key, 8)

    params, raw = build_params(kp)

    # Per-branch embeddings (stand-ins for the undefined upstream encoders).
    crystal = jax.random.normal(kc, (BATCH, HIDDEN), jnp.float32)
    kspace = jax.random.normal(kk, (BATCH, HIDDEN), jnp.float32)
    scalar = jax.random.normal(ksc, (BATCH, HIDDEN), jnp.float32)
    physics = jax.random.normal(kph, (BATCH, HIDDEN), jnp.float32)
    spectral = jax.random.normal(ksp, (BATCH, HIDDEN // 2), jnp.float32)
    ph = jax.random.normal(kphh, (BATCH, HIDDEN // 2), jnp.float32)
    topo_combined = jax.random.normal(kt, (BATCH, TOPO_DIM), jnp.float32)

    branches = [crystal, kspace, scalar, physics, spectral, ph]

    out = classifier_head(branches, topo_combined, params)
    out = jax.block_until_ready(out)

    fused_in = jnp.concatenate(branches, axis=1)          # torch.cat(features_list, dim=1)
    assert fused_in.shape == (BATCH, FUSION_IN)
    ref = reference_head(fused_in, topo_combined, raw)

    # Tolerance covers bf16 rounding of the MXU-folded L1 bias (reference keeps
    # biases in f32); everything else follows the same bf16 rounding points.
    for k in ("logits", "graph_features", "aux_logits", "confidence"):
        assert out[k].shape == ref[k].shape, (k, out[k].shape, ref[k].shape)
        assert jnp.allclose(out[k], ref[k], atol=3e-3, rtol=3e-3), k

    print("KERNEL_OK")
</pallas_src>

<mosaic_0001>
module attributes {stable_mosaic.version = 11 : i64} {
  func.func @_head_kernel(%arg0: i32, %arg1: memref<8x256xbf16, #tpu.memory_space<vmem>>, %arg2: memref<768x128xbf16, #tpu.memory_space<vmem>>, %arg3: memref<8x128xf32, #tpu.memory_space<vmem>>, %arg4: memref<8x128xf32, #tpu.memory_space<vmem>>) attributes {dimension_semantics = [#tpu.dimension_semantics<parallel>], iteration_bounds = array<i64: 1>, scalar_prefetch = 0 : i64, scratch_operands = 0 : i64, tpu.core_type = #tpu.core_type<tc>, window_params = [{transform_indices = @transform_0, window_bounds = array<i64: 8, 256>}, {pipeline_mode = #tpu.pipeline_mode<synchronous>, transform_indices = @transform_1, window_bounds = array<i64: 768, 128>}, {pipeline_mode = #tpu.pipeline_mode<synchronous>, transform_indices = @transform_2, window_bounds = array<i64: 8, 128>}, {transform_indices = @transform_3, window_bounds = array<i64: 8, 128>}]} {
    %c0 = arith.constant 0 : index
    %c0_0 = arith.constant 0 : index
    %0 = vector.load %arg1[%c0, %c0_0] : memref<8x256xbf16, #tpu.memory_space<vmem>>, vector<8x256xbf16>
    %c0_1 = arith.constant 0 : index
    %c0_2 = arith.constant 0 : index
    %1 = vector.load %arg2[%c0_1, %c0_2] : memref<768x128xbf16, #tpu.memory_space<vmem>>, vector<256x128xbf16>
    %cst = arith.constant dense<0.000000e+00> : vector<8x128xf32>
    %2 = tpu.matmul %0, %1, %cst {dimension_numbers = #tpu.dot_dimension_numbers<[1], [0], [0], [1], [0, 0, 1, 1], [], []>} : vector<8x256xbf16>, vector<256x128xbf16>, vector<8x128xf32> -> vector<8x128xf32>
    %cst_3 = arith.constant 0.000000e+00 : f32
    %3 = vector.broadcast %cst_3 : f32 to vector<8x128xf32>
    %4 = arith.maximumf %2, %3 : vector<8x128xf32>
    %5 = arith.truncf %4 : vector<8x128xf32> to vector<8x128xbf16>
    %c256 = arith.constant 256 : index
    %c0_4 = arith.constant 0 : index
    %6 = vector.load %arg2[%c256, %c0_4] : memref<768x128xbf16, #tpu.memory_space<vmem>>, vector<128x128xbf16>
    %cst_5 = arith.constant dense<0.000000e+00> : vector<8x128xf32>
    %7 = tpu.matmul %5, %6, %cst_5 {dimension_numbers = #tpu.dot_dimension_numbers<[1], [0], [0], [1], [0, 0, 1, 1], [], []>} : vector<8x128xbf16>, vector<128x128xbf16>, vector<8x128xf32> -> vector<8x128xf32>
    %c0_6 = arith.constant 0 : index
    %c0_7 = arith.constant 0 : index
    %8 = vector.load %arg3[%c0_6, %c0_7] : memref<8x128xf32, #tpu.memory_space<vmem>>, vector<1x128xf32>
    %9 = vector.broadcast %8 : vector<1x128xf32> to vector<8x128xf32>
    %10 = arith.addf %7, %9 : vector<8x128xf32>
    %11 = vector.extract_strided_slice %10 {offsets = [0, 32], sizes = [8, 2], strides = [1, 1]} : vector<8x128xf32> to vector<8x2xf32>
    %cst_8 = arith.constant 0.000000e+00 : f32
    %12 = vector.broadcast %cst_8 : f32 to vector<8x128xf32>
    %13 = arith.maximumf %10, %12 : vector<8x128xf32>
    %14 = arith.truncf %13 : vector<8x128xf32> to vector<8x128xbf16>
    %c384 = arith.constant 384 : index
    %c0_9 = arith.constant 0 : index
    %15 = vector.load %arg2[%c384, %c0_9] : memref<768x128xbf16, #tpu.memory_space<vmem>>, vector<128x128xbf16>
    %cst_10 = arith.constant dense<0.000000e+00> : vector<8x128xf32>
    %16 = tpu.matmul %14, %15, %cst_10 {dimension_numbers = #tpu.dot_dimension_numbers<[1], [0], [0], [1], [0, 0, 1, 1], [], []>} : vector<8x128xbf16>, vector<128x128xbf16>, vector<8x128xf32> -> vector<8x128xf32>
    %c1 = arith.constant 1 : index
    %c0_11 = arith.constant 0 : index
    %17 = vector.load %arg3[%c1, %c0_11] : memref<8x128xf32, #tpu.memory_space<vmem>>, vector<1x128xf32>
    %18 = vector.broadcast %17 : vector<1x128xf32> to vector<8x128xf32>
    %19 = arith.addf %16, %18 : vector<8x128xf32>
    %cst_12 = arith.constant 0.000000e+00 : f32
    %20 = vector.broadcast %cst_12 : f32 to vector<8x128xf32>
    %21 = arith.maximumf %19, %20 : vector<8x128xf32>
    %22 = arith.truncf %21 : vector<8x128xf32> to vector<8x128xbf16>
    %c512 = arith.constant 512 : index
    %c0_13 = arith.constant 0 : index
    %23 = vector.load %arg2[%c512, %c0_13] : memref<768x128xbf16, #tpu.memory_space<vmem>>, vector<128x128xbf16>
    %cst_14 = arith.constant dense<0.000000e+00> : vector<8x128xf32>
    %24 = tpu.matmul %22, %23, %cst_14 {dimension_numbers = #tpu.dot_dimension_numbers<[1], [0], [0], [1], [0, 0, 1, 1], [], []>} : vector<8x128xbf16>, vector<128x128xbf16>, vector<8x128xf32> -> vector<8x128xf32>
    %c2 = arith.constant 2 : index
    %c0_15 = arith.constant 0 : index
    %25 = vector.load %arg3[%c2, %c0_15] : memref<8x128xf32, #tpu.memory_space<vmem>>, vector<1x128xf32>
    %26 = vector.broadcast %25 : vector<1x128xf32> to vector<8x128xf32>
    %27 = arith.addf %24, %26 : vector<8x128xf32>
    %cst_16 = arith.constant 0.000000e+00 : f32
    %28 = vector.broadcast %cst_16 : f32 to vector<8x128xf32>
    %29 = arith.maximumf %27, %28 : vector<8x128xf32>
    %30 = arith.truncf %29 : vector<8x128xf32> to vector<8x128xbf16>
    %c640 = arith.constant 640 : index
    %c0_17 = arith.constant 0 : index
    %31 = vector.load %arg2[%c640, %c0_17] : memref<768x128xbf16, #tpu.memory_space<vmem>>, vector<128x128xbf16>
    %cst_18 = arith.constant dense<0.000000e+00> : vector<8x128xf32>
    %32 = tpu.matmul %30, %31, %cst_18 {dimension_numbers = #tpu.dot_dimension_numbers<[1], [0], [0], [1], [0, 0, 1, 1], [], []>} : vector<8x128xbf16>, vector<128x128xbf16>, vector<8x128xf32> -> vector<8x128xf32>
    %c3 = arith.constant 3 : index
    %c0_19 = arith.constant 0 : index
    %33 = vector.load %arg3[%c3, %c0_19] : memref<8x128xf32, #tpu.memory_space<vmem>>, vector<1x128xf32>
    %34 = vector.broadcast %33 : vector<1x128xf32> to vector<8x128xf32>
    %35 = arith.addf %32, %34 : vector<8x128xf32>
    %36 = vector.extract_strided_slice %35 {offsets = [0, 0], sizes = [8, 2], strides = [1, 1]} : vector<8x128xf32> to vector<8x2xf32>
    %37 = vector.extract_strided_slice %35 {offsets = [0, 2], sizes = [8, 1], strides = [1, 1]} : vector<8x128xf32> to vector<8x1xf32>
    %38 = arith.negf %37 : vector<8x1xf32>
    %39 = math.exp %38 : vector<8x1xf32>
    %cst_20 = arith.constant 1.000000e+00 : f32
    %40 = vector.broadcast %cst_20 : f32 to vector<8x1xf32>
    %41 = arith.addf %40, %39 : vector<8x1xf32>
    %42 = arith.divf %40, %41 : vector<8x1xf32>
    %43 = vector.extract_strided_slice %21 {offsets = [0, 0], sizes = [8, 16], strides = [1, 1]} : vector<8x128xf32> to vector<8x16xf32>
    %cst_21 = arith.constant 0.000000e+00 : f32
    %44 = vector.broadcast %cst_21 : f32 to vector<8x107xf32>
    %45 = tpu.concatenate %43, %36, %11, %42, %44 in 1 : vector<8x16xf32>, vector<8x2xf32>, vector<8x2xf32>, vector<8x1xf32>, vector<8x107xf32> -> vector<8x128xf32>
    %c0_22 = arith.constant 0 : index
    %c0_23 = arith.constant 0 : index
    %46 = vector.load %arg4[%c0_22, %c0_23] : memref<8x128xf32, #tpu.memory_space<vmem>>, vector<8x128xf32>
    tpu.vector_store %arg4[%c0_22, %c0_23], %45 {strides = array<i32>} : memref<8x128xf32, #tpu.memory_space<vmem>>, vector<8x128xf32>,
    return
  }
  func.func @transform_0(%arg0: i32) -> (i32, i32) {
    %c0_i32 = arith.constant 0 : i32
    %c0_i32_0 = arith.constant 0 : i32
    return %arg0, %c0_i32 : i32, i32
  }
  func.func @transform_1(%arg0: i32) -> (i32, i32) {
    %c0_i32 = arith.constant 0 : i32
    %c0_i32_0 = arith.constant 0 : i32
    %c0_i32_1 = arith.constant 0 : i32
    return %c0_i32, %c0_i32_0 : i32, i32
  }
  func.func @transform_2(%arg0: i32) -> (i32, i32) {
    %c0_i32 = arith.constant 0 : i32
    %c0_i32_0 = arith.constant 0 : i32
    %c0_i32_1 = arith.constant 0 : i32
    return %c0_i32, %c0_i32_0 : i32, i32
  }
  func.func @transform_3(%arg0: i32) -> (i32, i32) {
    %c0_i32 = arith.constant 0 : i32
    %c0_i32_0 = arith.constant 0 : i32
    return %arg0, %c0_i32 : i32, i32
  }
}

</mosaic_0001>

<bundles_post_ra>
// kernel: tpu_custom_call.1
= control target key start
LH: loop header
LB: loop body
LE: loop exit
PB: predicated region body
PF: predicated region fallthrough
CT: control target
= control target key end

     0   :  { %8 = vsyncpa [#allocation3], 0  ;;  %s1147_s0 = inlined_call_operand.hbm [shape: bf16[8,256], index: 0, kind: input, shape index: {}]   ;;  %s1148_s1 = inlined_call_operand.hbm [shape: bf16[768,128], index: 1, kind: input, shape index: {}]   ;;  %s1149_s2 = inlined_call_operand.hbm [shape: f32[8,128], index: 2, kind: input, shape index: {}]   ;;  %s1150_s3 = inlined_call_operand.hbm [shape: f32[8,128], index: 3, kind: output, shape index: {}]  }
   0x1   :  { %9 = vsyncpa [#allocation6], 0 }
   0x2   :  { %10 = vsyncpa [#allocation4], 0  ;;  %s1060_s12 = smov [#allocation5]  }
   0x3   :  { %s26_s13 = sshll.u32 %s1060_s12, 4  ;;  %s27_s13 = int_to_ptr.vmem [resolvable:$true] %s26_s13 }
   0x4   :  { %s982_s14 = scalar_lea.vmem %s27_s13, 6144  ;;  %p987_p1 = scmp.lt.s32.totalorder %s27_s13, %s27_s13 }
   0x5   :  { %p983_p0 = scmp.ne.s32.totalorder %s27_s13, %s982_s14  ;;  %p988_p2 = scmp.lt.s32.totalorder %s982_s14, %s982_s14 }
   0x7   :  { %p989_p3 = por %p988_p2, %p987_p1 }
   0x9   :  { %p990_p4 = pnand %p989_p3, %p983_p0 }
   0xb   :  { %993 = shalt.err (!%p990_p4)
}
   0xc   :  { %s1061_s15 = smov 64   ;;  %s1062_s16 = smov 4  }
   0xd   :  { %32 = dma.hbm_to_vmem [thread:$0]  %s1148_s1, 6144, %s27_s13, [#allocation6], %s1061_s15, %s1061_s15, %s1062_s16  }
   0xe   :  { %s1063_s19 = smov [#allocation2]   ;;  %s1064_s21 = smov [#allocation7]  }
   0xf   :  { %s17_s20 = sshll.u32 %s1063_s19, 4  ;;  %s39_s22 = sshll.u32 %s1064_s21, 4  ;;  %s18_s20 = int_to_ptr.vmem [resolvable:$true] %s17_s20  ;;  %s40_s22 = int_to_ptr.vmem [resolvable:$true] %s39_s22 }
  0x10   :  { %s1002_s23 = scalar_lea.vmem %s18_s20, 128  ;;  %p1007_p6 = scmp.lt.s32.totalorder %s18_s20, %s18_s20 }
  0x11   :  { %p1003_p5 = scmp.ne.s32.totalorder %s18_s20, %s1002_s23  ;;  %p1008_p7 = scmp.lt.s32.totalorder %s1002_s23, %s1002_s23 }
  0x13   :  { %p1009_p8 = por %p1008_p7, %p1007_p6 }
  0x15   :  { %p1010_p9 = pnand %p1009_p8, %p1003_p5 }
  0x17   :  { %1013 = shalt.err (!%p1010_p9)
}
  0x18   :  { %20 = dma.hbm_to_vmem [thread:$0]  %s1147_s0, 128, %s18_s20, [#allocation3]  }
  0x19   :  { %s1022_s26 = scalar_lea.vmem %s40_s22, 128  ;;  %p1027_p11 = scmp.lt.s32.totalorder %s40_s22, %s40_s22 }
  0x1a   :  { %p1023_p10 = scmp.ne.s32.totalorder %s40_s22, %s1022_s26  ;;  %p1028_p12 = scmp.lt.s32.totalorder %s1022_s26, %s1022_s26 }
  0x1c   :  { %p1029_p13 = por %p1028_p12, %p1027_p11 }
  0x1e   :  { %p1030_p0 = pnand %p1029_p13, %p1023_p10 }
  0x20   :  { %1033 = shalt.err (!%p1030_p0)
}
  0x21   :  { %42 = dma.hbm_to_vmem [thread:$0]  %s1149_s2, 128, %s40_s22, [#allocation6]  }
  0x22   :  { %1054 = dma.done.wait [#allocation3], 128  }
  0x23   :  { %1055 = vsyncadd [#allocation3], 4294967168 }
  0x24   :  { %1056 = dma.done.wait [#allocation6], 6272  }
  0x25   :  { %1057 = vsyncadd [#allocation6], 4294961024  ;;  %v1065_v0 = vmov 0.0   ;;  %v920_v1 = vld [vmem:[#allocation5 + $0x78] sm:$0xff]   ;;  %v922_v3 = vld [vmem:[#allocation5 + $0x70] sm:$0xff]   ;;  %vm1066_vm0 = vmmov 0  }
  0x26   :  { %829 = vmatprep.subr.bf16.mxu1 %v1065_v0  ;;  %v921_v2 = vld [vmem:[#allocation5 + $0x38] sm:$0xff]   ;;  %771 = vmatprep.subr.bf16.mxu0 %v920_v1  ;;  %v923_v4 = vld [vmem:[#allocation5 + $0x30] sm:$0xff]   ;;  %v924_v5 = vld [vmem:[#allocation5 + $0x68] sm:$0xff]   ;;  %s1067_s0 = smov 16   ;;  %s1068_s2 = smov 114   ;;  %vm691_vm1 = vcmask 130048  }
  0x27   :  { %772 = vmatpush3.bf16.msra.mxu0 %v921_v2  ;;  %v925_v6 = vld [vmem:[#allocation5 + $0x28] sm:$0xff]   ;;  %v926_v7 = vld [vmem:[#allocation5 + $0x60] sm:$0xff]   ;;  %v928_v9 = vld [vmem:[#allocation5 + $0x58] sm:$0xff]   ;;  %845 = vmatprep.mubr.msk.bf16.mxu1 %vm1066_vm0, %v1065_v0  ;;  %s1069_s28 = smov 18   ;;  %vm693_vm2 = vcmask 146432   ;;  %vm695_vm3 = vcmask 162816  }
  0x28   :  { %773 = vmatprep.subr.bf16.mxu0 %v922_v3  ;;  %v927_v8 = vld [vmem:[#allocation5 + $0x20] sm:$0xff]   ;;  %v929_v10 = vld [vmem:[#allocation5 + $0x18] sm:$0xff]   ;;  %v930_v11 = vld [vmem:[#allocation5 + $0x50] sm:$0xff]   ;;  %s1070_s29 = smov [#allocation8]   ;;  %vm697_vm4 = vcmask 171008  }
  0x29   :  { %v53_v12 = vld [vmem:[#allocation2] sm:$0xff]  ;;  %v931_v15 = vld [vmem:[#allocation5 + $0x10] sm:$0xff]   ;;  %v932_v16 = vld [vmem:[#allocation5 + $0x48] sm:$0xff]   ;;  %s706_s30 = sshll.u32 %s1070_s29, 4  ;;  %s707_s30 = int_to_ptr.vmem [resolvable:$true] %s706_s30 }
  0x2a   :  { %v717_v13 = vcombine.high %v53_v12, %v53_v12  ;;  %v938_v14 = vld [vmem:[#allocation5 + $0xb8] sm:$0xff]   ;;  %v939_v17 = vld [vmem:[#allocation5 + $0xb0] sm:$0xff]   ;;  %v933_v18 = vld [vmem:[#allocation5 + $0x8] sm:$0xff]   ;;  %v716_v23 = vcombine.low %v53_v12, %v53_v12  ;;  %s1034_s4 = scalar_lea.vmem %s707_s30, 128  ;;  %p1039_p2 = scmp.lt.s32.totalorder %s707_s30, %s707_s30 }
  0x2b   :  { %774 = vmatpush3.bf16.msra.mxu0 %v923_v4  ;;  %830 = vmatpush3.bf16.msra.mxu1 %v938_v14  ;;  %v934_v19 = vld [vmem:[#allocation5 + $0x40] sm:$0xff]   ;;  %v940_v20 = vld [vmem:[#allocation5 + $0xa8] sm:$0xff]   ;;  %v942_v24 = vld [vmem:[#allocation5 + $0x98] sm:$0xff]   ;;  %p1035_p1 = scmp.ne.s32.totalorder %s707_s30, %s1034_s4  ;;  %p1040_p3 = scmp.lt.s32.totalorder %s1034_s4, %s1034_s4 }
  0x2c   :  { %775 = vmatprep.subr.bf16.mxu0 %v924_v5  ;;  %221 = vmatprep.mubr.bf16.mxu0 %v717_v13  ;;  %v935_v21 = vld [vmem:[#allocation5] sm:$0xff]   ;;  %v943_v25 = vld [vmem:[#allocation5 + $0x90] sm:$0xff]   ;;  %v944_v26 = vld [vmem:[#allocation5 + $0x88] sm:$0xff]  }
  0x2d   :  { %831 = vmatprep.subr.bf16.mxu1 %v1065_v0  ;;  %v941_v22 = vld [vmem:[#allocation5 + $0xa0] sm:$0xff]   ;;  %v946_v28 = vld [vmem:[#allocation5 + $0xf8] sm:$0xff]   ;;  %v947_v29 = vld [vmem:[#allocation5 + $0xf0] sm:$0xff]   ;;  %p1041_p4 = por %p1040_p3, %p1039_p2 }
  0x2e   :  { %v945_v27 = vld [vmem:[#allocation5 + $0x80] sm:$0xff]   ;;  %v948_v30 = vld [vmem:[#allocation5 + $0xe8] sm:$0xff]   ;;  %v950_v32 = vld [vmem:[#allocation5 + $0xd8] sm:$0xff]  }
  0x2f   :  { %776 = vmatpush3.bf16.msra.mxu0 %v925_v6  ;;  %832 = vmatpush3.bf16.msra.mxu1 %v939_v17  ;;  %v949_v31 = vld [vmem:[#allocation5 + $0xe0] sm:$0xff]   ;;  %v951_v33 = vld [vmem:[#allocation5 + $0xd0] sm:$0xff]   ;;  %v952_v41 = vld [vmem:[#allocation5 + $0xc8] sm:$0xff]   ;;  %p1042_p5 = pnand %p1041_p4, %p1035_p1 }
  0x30   :  { %777 = vmatprep.subr.bf16.mxu0 %v926_v7  ;;  %833 = vmatprep.subr.bf16.mxu1 %v1065_v0  ;;  %v953_v42 = vld [vmem:[#allocation5 + $0xc0] sm:$0xff]   ;;  %v954_v43 = vld [vmem:[#allocation5 + $0x138] sm:$0xff]   ;;  %v955_v44 = vld [vmem:[#allocation5 + $0x130] sm:$0xff]  }
  0x31   :  { %v956_v45 = vld [vmem:[#allocation5 + $0x128] sm:$0xff]   ;;  %v957_v46 = vld [vmem:[#allocation5 + $0x120] sm:$0xff]   ;;  %v958_v47 = vld [vmem:[#allocation5 + $0x118] sm:$0xff]  }
  0x32   :  { %v959_v48 = vld [vmem:[#allocation5 + $0x110] sm:$0xff]   ;;  %v734_v49 = vld [vmem:[#allocation7] ss:$0 sm:$0xff]  ;;  %v960_v57 = vld [vmem:[#allocation5 + $0x108] sm:$0xff]  }
  0x33   :  { %778 = vmatpush3.bf16.msra.mxu0 %v927_v8  ;;  %834 = vmatpush3.bf16.msra.mxu1 %v940_v20  ;;  %v961_v58 = vld [vmem:[#allocation5 + $0x100] sm:$0xff]   ;;  %v962_v59 = vld [vmem:[#allocation5 + $0x178] sm:$0xff]   ;;  %v963_v60 = vld [vmem:[#allocation5 + $0x170] sm:$0xff]  }
  0x34   :  { %779 = vmatprep.subr.bf16.mxu0 %v928_v9  ;;  %835 = vmatprep.subr.bf16.mxu1 %v1065_v0  ;;  %v964_v61 = vld [vmem:[#allocation5 + $0x168] sm:$0xff]   ;;  %v965_v62 = vld [vmem:[#allocation5 + $0x160] sm:$0xff]   ;;  %v966_v63 = vld [vmem:[#allocation5 + $0x158] sm:$0xff]  }
  0x35   :  { %v967_v1 = vld [vmem:[#allocation5 + $0x150] sm:$0xff]   ;;  %v743_v2 = vld [vmem:[#allocation7 + $0x1] ss:$0 sm:$0xff]  ;;  %v752_v12 = vld [vmem:[#allocation7 + $0x2] ss:$0 sm:$0xff] }
  0x36   :  { %v761_v20 = vld [vmem:[#allocation7 + $0x3] ss:$0 sm:$0xff] }
  0x37   :  { %780 = vmatpush3.bf16.msra.mxu0 %v929_v10  ;;  %836 = vmatpush3.bf16.msra.mxu1 %v941_v22  ;;  %v968_v10 = vld [vmem:[#allocation5 + $0x148] sm:$0xff]  }
  0x38   :  { %781 = vmatprep.subr.bf16.mxu0 %v930_v11  ;;  %837 = vmatprep.subr.bf16.mxu1 %v1065_v0  ;;  %v969_v11 = vld [vmem:[#allocation5 + $0x140] sm:$0xff]  }
  0x3b   :  { %782 = vmatpush3.bf16.msra.mxu0 %v931_v15  ;;  %838 = vmatpush3.bf16.msra.mxu1 %v942_v24 }
  0x3c   :  { %783 = vmatprep.subr.bf16.mxu0 %v932_v16  ;;  %839 = vmatprep.subr.bf16.mxu1 %v1065_v0 }
  0x3f   :  { %784 = vmatpush3.bf16.msra.mxu0 %v933_v18  ;;  %840 = vmatpush3.bf16.msra.mxu1 %v943_v25 }
  0x40   :  { %785 = vmatprep.subr.bf16.mxu0 %v934_v19  ;;  %841 = vmatprep.subr.bf16.mxu1 %v1065_v0 }
  0x43   :  { %786 = vmatpush3.bf16.msra.mxu0 %v935_v21  ;;  %842 = vmatpush3.bf16.msra.mxu1 %v944_v26 }
  0x44   :  { %849 = vmatprep.subr.bf16.mxu0 %v1065_v0  ;;  %843 = vmatprep.subr.bf16.mxu1 %v1065_v0 }
  0x46   :  { %222 = vmatmul.mubr.bf16.vlgmr.msra.gmra.mxu0 %v716_v23 }
  0x47   :  { %844 = vmatpush3.bf16.msra.mxu1 %v945_v27  ;;  %865 = vmatprep.mubr.msk.bf16.mxu0 %vm1066_vm0, %v1065_v0 }
  0x48   :  { %869 = vmatprep.subr.bf16.mxu1 %v1065_v0  ;;  %850 = vmatpush3.bf16.msra.mxu0 %v946_v28 }
  0x49   :  { %851 = vmatprep.subr.bf16.mxu0 %v1065_v0 }
  0x4c   :  { %852 = vmatpush3.bf16.msra.mxu0 %v947_v29 }
  0x4d   :  { %853 = vmatprep.subr.bf16.mxu0 %v1065_v0 }
  0x50   :  { %854 = vmatpush3.bf16.msra.mxu0 %v948_v30 }
  0x51   :  { %855 = vmatprep.subr.bf16.mxu0 %v1065_v0 }
  0x54   :  { %856 = vmatpush3.bf16.msra.mxu0 %v949_v31 }
  0x55   :  { %857 = vmatprep.subr.bf16.mxu0 %v1065_v0 }
  0x58   :  { %858 = vmatpush3.bf16.msra.mxu0 %v950_v32 }
  0x59   :  { %859 = vmatprep.subr.bf16.mxu0 %v1065_v0 }
  0x5c   :  { %860 = vmatpush3.bf16.msra.mxu0 %v951_v33 }
  0x5d   :  { %861 = vmatprep.subr.bf16.mxu0 %v1065_v0 }
  0x60   :  { %862 = vmatpush3.bf16.msra.mxu0 %v952_v41 }
  0x61   :  { %863 = vmatprep.subr.bf16.mxu0 %v1065_v0 }
  0x64   :  { %864 = vmatpush3.bf16.msra.mxu0 %v953_v42 }
  0x65   :  { %889 = vmatprep.subr.bf16.mxu0 %v1065_v0 }
 0x106   :  { %v787_v34 = vpop.f32.mrf.mxu0 }
 0x108   :  { %v788_v35 = vpop.f32.mrf.mxu0 }
 0x109   :  { %v789_v36 = vadd.f32 %v788_v35, %v787_v34 }
 0x10a   :  { %v790_v37 = vpop.f32.mrf.mxu0 }
 0x10b   :  { %v229_v38 = vmax.f32 %v789_v36, 0.0 }
 0x10c   :  { %v791_v39 = vpop.f32.mrf.mxu0 }
 0x10d   :  { %v230_v40 = vpack.c.bf16 %v229_v38, %v229_v38 }
 0x10f   :  { %846 = vmatmul.mubr.bf16.vlgmr.msra.gmra.mxu1 %v230_v40 }
 0x110   :  { %885 = vmatprep.mubr.msk.bf16.mxu1 %vm1066_vm0, %v1065_v0  ;;  %870 = vmatpush3.bf16.msra.mxu1 %v954_v43 }
 0x111   :  { %871 = vmatprep.subr.bf16.mxu1 %v1065_v0 }
 0x114   :  { %872 = vmatpush3.bf16.msra.mxu1 %v955_v44 }
 0x115   :  { %873 = vmatprep.subr.bf16.mxu1 %v1065_v0 }
 0x118   :  { %874 = vmatpush3.bf16.msra.mxu1 %v956_v45 }
 0x119   :  { %875 = vmatprep.subr.bf16.mxu1 %v1065_v0 }
 0x11c   :  { %876 = vmatpush3.bf16.msra.mxu1 %v957_v46 }
 0x11d   :  { %877 = vmatprep.subr.bf16.mxu1 %v1065_v0 }
 0x120   :  { %878 = vmatpush3.bf16.msra.mxu1 %v958_v47 }
 0x121   :  { %879 = vmatprep.subr.bf16.mxu1 %v1065_v0 }
 0x124   :  { %880 = vmatpush3.bf16.msra.mxu1 %v959_v48 }
 0x125   :  { %881 = vmatprep.subr.bf16.mxu1 %v1065_v0 }
 0x128   :  { %882 = vmatpush3.bf16.msra.mxu1 %v960_v57 }
 0x129   :  { %883 = vmatprep.subr.bf16.mxu1 %v1065_v0 }
 0x12c   :  { %884 = vmatpush3.bf16.msra.mxu1 %v961_v58 }
 0x1cf   :  { %v334_v50 = vpop.f32.mrf.mxu1 }
 0x1d0   :  { %v1130_v51 = vadd.f32 %v734_v49, %v334_v50 }
 0x1d1   :  { %v847_v52 = vpop.f32.mrf.mxu1 }
 0x1d2   :  { %v340_v53 = vmax.f32 %v1130_v51, 0.0 }
 0x1d3   :  { %v337_v54 = vpop.f32.mrf.mxu1 }
 0x1d4   :  { %v341_v55 = vpack.c.bf16 %v340_v53, %v340_v53 }
 0x1d5   :  { %v848_v56 = vpop.f32.mrf.mxu1 }
 0x1d6   :  { %866 = vmatmul.mubr.bf16.vlgmr.msra.gmra.mxu0 %v341_v55 }
 0x1d7   :  { %905 = vmatprep.mubr.msk.bf16.mxu0 %vm1066_vm0, %v1065_v0  ;;  %890 = vmatpush3.bf16.msra.mxu0 %v962_v59 }
 0x1d8   :  { %891 = vmatprep.subr.bf16.mxu0 %v1065_v0 }
 0x1db   :  { %892 = vmatpush3.bf16.msra.mxu0 %v963_v60 }
 0x1dc   :  { %893 = vmatprep.subr.bf16.mxu0 %v1065_v0 }
 0x1df   :  { %894 = vmatpush3.bf16.msra.mxu0 %v964_v61 }
 0x1e0   :  { %895 = vmatprep.subr.bf16.mxu0 %v1065_v0 }
 0x1e3   :  { %896 = vmatpush3.bf16.msra.mxu0 %v965_v62 }
 0x1e4   :  { %897 = vmatprep.subr.bf16.mxu0 %v1065_v0 }
 0x1e7   :  { %898 = vmatpush3.bf16.msra.mxu0 %v966_v63 }
 0x1e8   :  { %899 = vmatprep.subr.bf16.mxu0 %v1065_v0 }
 0x1eb   :  { %900 = vmatpush3.bf16.msra.mxu0 %v967_v1 }
 0x1ec   :  { %901 = vmatprep.subr.bf16.mxu0 %v1065_v0 }
 0x1ef   :  { %902 = vmatpush3.bf16.msra.mxu0 %v968_v10 }
 0x1f0   :  { %903 = vmatprep.subr.bf16.mxu0 %v1065_v0 }
 0x1f3   :  { %904 = vmatpush3.bf16.msra.mxu0 %v969_v11 }
 0x296   :  { %v445_v3 = vpop.f32.mrf.mxu0 }
 0x297   :  { %v446_v4 = vadd.f32 %v743_v2, %v445_v3 }
 0x298   :  { %v867_v5 = vpop.f32.mrf.mxu0 }
 0x299   :  { %v451_v6 = vmax.f32 %v446_v4, 0.0 }
 0x29a   :  { %v448_v7 = vpop.f32.mrf.mxu0 }
 0x29b   :  { %v452_v8 = vpack.c.bf16 %v451_v6, %v451_v6 }
 0x29c   :  { %v868_v9 = vpop.f32.mrf.mxu0 }
 0x29d   :  { %886 = vmatmul.mubr.bf16.vlgmr.msra.gmra.mxu1 %v452_v8 }
 0x35d   :  { %v556_v13 = vpop.f32.mrf.mxu1 }
 0x35e   :  { %v557_v14 = vadd.f32 %v752_v12, %v556_v13 }
 0x35f   :  { %v887_v15 = vpop.f32.mrf.mxu1 }
 0x360   :  { %v562_v16 = vmax.f32 %v557_v14, 0.0 }
 0x361   :  { %v559_v17 = vpop.f32.mrf.mxu1 }
 0x362   :  { %v563_v18 = vpack.c.bf16 %v562_v16, %v562_v16 }
 0x363   :  { %v888_v19 = vpop.f32.mrf.mxu1 }
 0x364   :  { %906 = vmatmul.mubr.bf16.vlgmr.msra.gmra.mxu0 %v563_v18 }
 0x424   :  { %v667_v21 = vpop.f32.mrf.mxu0 }
 0x425   :  { %v668_v22 = vadd.f32 %v761_v20, %v667_v21 }
 0x426   :  { %v907_v23 = vpop.f32.mrf.mxu0 }
 0x427   :  { %v770_v24 = vmul.f32 -1.442695, %v668_v22  ;;  %680 = vrot.lane.b32.xlu0 %v668_v22, %s1067_s0 }
 0x428   :  { %v670_v25 = vpop.f32.mrf.mxu0 }
 0x429   :  { %970 = vpow2.f32 %v770_v24 }
 0x42a   :  { %v908_v0 = vpop.f32.mrf.mxu0 }
 0x42b   :  { %684 = vrot.lane.b32.xlu0 %v1130_v51, %s1068_s2 }
 0x436   :  { %v971_v26 = vpop.eup %970 }
 0x437   :  { %v676_v27 = vadd.f32 1.0, %v971_v26 }
 0x439   :  { %972 = vrcp.f32 %v676_v27 }
 0x446   :  { %v973_v28 = vpop.eup %972 }
 0x447   :  { %688 = vrot.lane.b32.xlu1 %v973_v28, %s1069_s28 }
 0x499   :  { %v681_v29 = vpop.permute.xlu0 %680 }
 0x49a   :  { %v692_v31 = vsel %vm691_vm1, %v451_v6, %v681_v29 }
 0x49d   :  { %v685_v30 = vpop.permute.xlu0 %684 }
 0x49e   :  { %v694_v32 = vsel %vm693_vm2, %v692_v31, %v685_v30 }
 0x4b9   :  { %v689_v33 = vpop.permute.xlu1 %688 }
 0x4ba   :  { %v696_v34 = vsel %vm695_vm3, %v694_v32, %v689_v33 }
 0x4bb   :  { %v698_v35 = vsel %vm697_vm4, %v696_v34, 0.0 }
 0x4bc   :  { %699 = vst [vmem:[#allocation8] sm:$0xff] %v698_v35 }
 0x4bd   :  { %1045 = shalt.err (!%p1042_p5)
}
 0x4be   :  { %709 = dma.vmem_to_hbm [thread:$0]  %s707_s30, 128, %s1150_s3, [#allocation4]  }
 0x4bf   :  { %1058 = dma.done.wait [#allocation4], 128  }
 0x4c0   :  { %1059 = vsyncadd [#allocation4], 4294967168 }
 0x4c1   :  { %713 = vsyncpa [#allocation3], 1 }
 0x4c2   :  { %714 = vsyncpa [#allocation6], 1 }
 0x4c3   :  { %715 = vsyncpa [#allocation4], 1 }

</bundles_post_ra>
